<compile_context>
chip_gen: v5e
topology: v5e:2x2
jax: 0.10.0
libtpu: 0.0.40
codegen_flags: <defaults>
</compile_context>

<pallas_src>
import functools

import jax
import jax.numpy as jnp
from jax.experimental import pallas as pl
from jax.experimental.pallas import tpu as pltpu


def _unet_down_kernel(w_ref, x_ref, o_ref, p_scr, *, c_in, ho, wo):
    # w_ref: (C_out, 16*C_in)              bf16, resident (same block every step)
    # x_ref: (b_tile, 8, C_in, (Ho+1)*Wo)  bf16 dual-shift stride-2 phases
    # o_ref: (b_tile, C_out, Ho*Wo)        output (P = Ho*Wo on lanes -> dense stores)
    # p_scr: (16*C_in, Ho*Wo)              bf16 VMEM scratch: in-kernel im2col patches
    p = ho * wo
    w = w_ref[...]                                   # hoisted: loaded once per step
    b_tile = x_ref.shape[0]
    inv_p = jnp.float32(1.0 / p)

    def body(b, carry):
        # In-kernel im2col: 16 contiguous lane-window copies into VMEM scratch.
        for hp in range(2):                          # kh parity
            for kw in range(4):
                ph = x_ref[b, hp * 4 + kw]           # (C_in, (Ho+1)*Wo) bf16
                for dh in range(2):
                    kh = 2 * dh + hp
                    t = kh * 4 + kw                  # matches weight K ordering
                    p_scr[t * c_in:(t + 1) * c_in, :] = ph[:, dh * wo:dh * wo + p]

        # Single lane-dense MXU matmul, bf16 operands, f32 accumulation.
        y = jnp.dot(w, p_scr[...], preferred_element_type=jnp.float32)  # (C_out, P)

        # InstanceNorm2d (affine=False, eps=1e-5): two-pass stats over P (f32,
        # reductions on XLU, rsqrt on EUP).
        mean = jnp.sum(y, axis=1, keepdims=True) * inv_p
        cent = y - mean
        var = jnp.sum(cent * cent, axis=1, keepdims=True) * inv_p
        y = cent * jax.lax.rsqrt(var + 1e-5)

        # LeakyReLU(0.2)
        y = jnp.where(y > 0, y, 0.2 * y)
        o_ref[b] = y.astype(o_ref.dtype)
        return carry

    jax.lax.fori_loop(0, b_tile, body, 0, unroll=b_tile <= 2)


def _vmem_limit_bytes():
    """min(96 MiB, 3/4 of physical VMEM): 96 MiB on v5e/v6e, 48 MiB on v7x."""
    try:
        cap = int(pltpu.get_tpu_info().vmem_capacity_bytes)
    except Exception:
        cap = 64 * 1024 * 1024
    return min(96 * 1024 * 1024, (cap * 3) // 4)


def _choose_b_tile(n, c_in, c_out, l_b, p, out_bytes, budget_bytes):
    """Largest divisor of N fitting the budget, capped so the grid keeps >= ~4 steps."""
    k = 16 * c_in
    per_sample = (2 * (8 * c_in * l_b * 2)        # bf16 phase block, double-buffered
                  + 2 * (c_out * p * out_bytes))  # output block, double-buffered
    fixed = (2 * (c_out * k * 2)                  # resident weight (2 pipeline buffers)
             + k * p * 2                          # in-kernel patch scratch (bf16)
             + 3 * (c_out * p * 4))               # f32 intermediates of the live sample
    cap = max(1, n // 4)                          # >= ~4 grid steps (>= 2 for N >= 2)
    best = 1
    for cand in range(1, cap + 1):
        if n % cand == 0 and fixed + cand * per_sample <= budget_bytes:
            best = cand
    return best


def unet_down(x, weight, bias=None, *, out_dtype=jnp.float32):
    """UNetDown forward (normalize=True, dropout=0.0 — the default config).

    x:      (N, C_in, H, W)   float32, NCHW (PyTorch convention)
    weight: (C_out, C_in, 4, 4)
    bias:   (C_out,)          accepted for signature parity; mathematically a
                              no-op because InstanceNorm removes the per-channel
                              mean (so it is not passed to the kernel).
    returns (N, C_out, H//2, W//2) in out_dtype (float32 by default).
    """
    del bias  # cancelled by InstanceNorm on the normalize=True path
    n, c_in, h, w_dim = x.shape
    c_out = weight.shape[0]
    assert h % 2 == 0 and w_dim % 2 == 0, "UNetDown expects even spatial dims"
    ho, wo = h // 2, w_dim // 2
    p = ho * wo
    l_b = (ho + 1) * wo

    # bf16 cast + zero-pad + dual-shift stride-2 phase split (one XLA copy pass,
    # ~2x input bytes in bf16 — no HBM-materialized K x P im2col tensor).
    xb = jnp.pad(x.astype(jnp.bfloat16), ((0, 0), (0, 0), (1, 1), (1, 1)))
    cols = []
    for hp in range(2):
        for kw in range(4):
            cols.append(xb[:, :, hp::2, kw:kw + 2 * wo:2])   # (N, C_in, Ho+1, Wo)
    phases = jnp.stack(cols, axis=1).reshape(n, 8, c_in, l_b)

    # Weight (C_out, C_in, 4, 4) -> (C_out, 16*C_in); K ordered (kh, kw, c) to
    # match the in-kernel patch build.  No HBM-side K padding.
    w2 = weight.transpose(0, 2, 3, 1).reshape(c_out, 16 * c_in).astype(jnp.bfloat16)

    vmem_limit = _vmem_limit_bytes()
    out_bytes = jnp.dtype(out_dtype).itemsize
    b_tile = _choose_b_tile(n, c_in, c_out, l_b, p, out_bytes,
                            budget_bytes=int(vmem_limit * 0.6))

    kernel = functools.partial(_unet_down_kernel, c_in=c_in, ho=ho, wo=wo)
    out = pl.pallas_call(
        kernel,
        out_shape=jax.ShapeDtypeStruct((n, c_out, p), out_dtype),
        grid_spec=pltpu.PrefetchScalarGridSpec(
            num_scalar_prefetch=0,
            grid=(n // b_tile,),
            in_specs=[
                pl.BlockSpec((c_out, 16 * c_in), lambda i: (0, 0)),       # resident weight
                pl.BlockSpec((b_tile, 8, c_in, l_b), lambda i: (i, 0, 0, 0)),
            ],
            out_specs=pl.BlockSpec((b_tile, c_out, p), lambda i: (i, 0, 0)),
            scratch_shapes=[pltpu.VMEM((16 * c_in, p), jnp.bfloat16)],
        ),
        compiler_params=pltpu.CompilerParams(
            dimension_semantics=("parallel",),
            vmem_limit_bytes=vmem_limit),
    )(w2, phases)

    # (N, C_out, P) -> (N, C_out, Ho, Wo): already NCHW, pure (free) reshape.
    return out.reshape(n, c_out, ho, wo)


def _reference(x, weight, bias):
    """Pure-JAX f32 reference (conv + instance norm + leaky relu)."""
    y = jax.lax.conv_general_dilated(
        x, weight, window_strides=(2, 2), padding=((1, 1), (1, 1)),
        dimension_numbers=("NCHW", "OIHW", "NCHW"))
    y = y + bias.reshape(1, -1, 1, 1)
    mean = jnp.mean(y, axis=(2, 3), keepdims=True)
    var = jnp.mean((y - mean) ** 2, axis=(2, 3), keepdims=True)
    y = (y - mean) / jnp.sqrt(var + 1e-5)
    return jnp.where(y > 0, y, 0.2 * y)


if __name__ == "__main__":
    key = jax.random.PRNGKey(0)
    kx, kw_, kb = jax.random.split(key, 3)

    N, C_in, H, W = 2, 4, 16, 16
    C_out = 8

    x = jax.random.normal(kx, (N, C_in, H, W), dtype=jnp.float32)
    # Deterministic synthetic parameters (Conv2d(in_size=4, out_size=8, 4, 2, 1)).
    fan_in = C_in * 4 * 4
    bound = 1.0 / (fan_in ** 0.5)
    weight = jax.random.uniform(kw_, (C_out, C_in, 4, 4), jnp.float32, -bound, bound)
    bias = jax.random.uniform(kb, (C_out,), jnp.float32, -bound, bound)

    out = jax.block_until_ready(unet_down(x, weight, bias))
    assert out.shape == (N, C_out, H // 2, W // 2)
    assert out.dtype == jnp.float32

    # Kernel-correctness check: reference with the same bf16 input quantization
    # (kernel accumulates in f32 and runs the norm epilogue in f32).
    ref_q = _reference(x.astype(jnp.bfloat16).astype(jnp.float32),
                       weight.astype(jnp.bfloat16).astype(jnp.float32), bias)
    assert jnp.allclose(out, ref_q, atol=1e-3, rtol=1e-3), (
        "kernel mismatch vs bf16-quantized reference: "
        f"max abs err {jnp.max(jnp.abs(out - ref_q))}")

    # Module-semantics check vs the pure f32 reference; deviation is bounded by
    # the intentional bf16 quantization of the conv inputs (documented numerics
    # contract).
    ref = _reference(x, weight, bias)
    assert jnp.allclose(out, ref, atol=5e-2, rtol=5e-2), (
        f"kernel too far from f32 reference: max abs err {jnp.max(jnp.abs(out - ref))}")

    print("KERNEL_OK")
</pallas_src>

<mosaic_0001>
module attributes {stable_mosaic.version = 11 : i64} {
  func.func @_unet_down_kernel(%arg0: i32, %arg1: memref<8x64xbf16, #tpu.memory_space<vmem>>, %arg2: memref<1x8x4x72xbf16, #tpu.memory_space<vmem>>, %arg3: memref<1x8x64xf32, #tpu.memory_space<vmem>>, %arg4: memref<64x64xbf16, #tpu.memory_space<vmem>>) attributes {dimension_semantics = [#tpu.dimension_semantics<parallel>], iteration_bounds = array<i64: 2>, scalar_prefetch = 0 : i64, scratch_operands = 1 : i64, tpu.core_type = #tpu.core_type<tc>, window_params = [{pipeline_mode = #tpu.pipeline_mode<synchronous>, transform_indices = @transform_0, window_bounds = array<i64: 8, 64>}, {transform_indices = @transform_1, window_bounds = array<i64: 1, 8, 4, 72>}, {transform_indices = @transform_2, window_bounds = array<i64: 1, 8, 64>}]} {
    %c0 = arith.constant 0 : index
    %c0_0 = arith.constant 0 : index
    %0 = vector.load %arg1[%c0, %c0_0] : memref<8x64xbf16, #tpu.memory_space<vmem>>, vector<8x64xbf16>
    %cst = arith.constant 1.562500e-02 : f32
    %c0_i32 = arith.constant 0 : i32
    %1 = arith.index_cast %c0_i32 : i32 to index
    %c0_1 = arith.constant 0 : index
    %c0_2 = arith.constant 0 : index
    %c0_3 = arith.constant 0 : index
    %2 = vector.load %arg2[%1, %c0_1, %c0_2, %c0_3] : memref<1x8x4x72xbf16, #tpu.memory_space<vmem>>, vector<1x1x4x72xbf16>
    %3 = vector.shape_cast %2 : vector<1x1x4x72xbf16> to vector<4x72xbf16>
    %4 = vector.extract_strided_slice %3 {offsets = [0, 0], sizes = [4, 64], strides = [1, 1]} : vector<4x72xbf16> to vector<4x64xbf16>
    %c0_4 = arith.constant 0 : index
    %c0_5 = arith.constant 0 : index
    %5 = vector.load %arg4[%c0_4, %c0_5] : memref<64x64xbf16, #tpu.memory_space<vmem>>, vector<4x64xbf16>
    tpu.vector_store %arg4[%c0_4, %c0_5], %4 {strides = array<i32>} : memref<64x64xbf16, #tpu.memory_space<vmem>>, vector<4x64xbf16>,
    %6 = vector.extract_strided_slice %3 {offsets = [0, 8], sizes = [4, 64], strides = [1, 1]} : vector<4x72xbf16> to vector<4x64xbf16>
    %c32 = arith.constant 32 : index
    %c0_6 = arith.constant 0 : index
    %7 = vector.load %arg4[%c32, %c0_6] : memref<64x64xbf16, #tpu.memory_space<vmem>>, vector<4x64xbf16>
    tpu.vector_store %arg4[%c32, %c0_6], %6 {strides = array<i32>} : memref<64x64xbf16, #tpu.memory_space<vmem>>, vector<4x64xbf16>,
    %8 = arith.index_cast %c0_i32 : i32 to index
    %c1 = arith.constant 1 : index
    %c0_7 = arith.constant 0 : index
    %c0_8 = arith.constant 0 : index
    %9 = vector.load %arg2[%8, %c1, %c0_7, %c0_8] : memref<1x8x4x72xbf16, #tpu.memory_space<vmem>>, vector<1x1x4x72xbf16>
    %10 = vector.shape_cast %9 : vector<1x1x4x72xbf16> to vector<4x72xbf16>
    %11 = vector.extract_strided_slice %10 {offsets = [0, 0], sizes = [4, 64], strides = [1, 1]} : vector<4x72xbf16> to vector<4x64xbf16>
    %c4 = arith.constant 4 : index
    %c0_9 = arith.constant 0 : index
    %12 = vector.load %arg4[%c4, %c0_9] : memref<64x64xbf16, #tpu.memory_space<vmem>>, vector<4x64xbf16>
    tpu.vector_store %arg4[%c4, %c0_9], %11 {strides = array<i32>} : memref<64x64xbf16, #tpu.memory_space<vmem>>, vector<4x64xbf16>,
    %13 = vector.extract_strided_slice %10 {offsets = [0, 8], sizes = [4, 64], strides = [1, 1]} : vector<4x72xbf16> to vector<4x64xbf16>
    %c36 = arith.constant 36 : index
    %c0_10 = arith.constant 0 : index
    %14 = vector.load %arg4[%c36, %c0_10] : memref<64x64xbf16, #tpu.memory_space<vmem>>, vector<4x64xbf16>
    tpu.vector_store %arg4[%c36, %c0_10], %13 {strides = array<i32>} : memref<64x64xbf16, #tpu.memory_space<vmem>>, vector<4x64xbf16>,
    %15 = arith.index_cast %c0_i32 : i32 to index
    %c2 = arith.constant 2 : index
    %c0_11 = arith.constant 0 : index
    %c0_12 = arith.constant 0 : index
    %16 = vector.load %arg2[%15, %c2, %c0_11, %c0_12] : memref<1x8x4x72xbf16, #tpu.memory_space<vmem>>, vector<1x1x4x72xbf16>
    %17 = vector.shape_cast %16 : vector<1x1x4x72xbf16> to vector<4x72xbf16>
    %18 = vector.extract_strided_slice %17 {offsets = [0, 0], sizes = [4, 64], strides = [1, 1]} : vector<4x72xbf16> to vector<4x64xbf16>
    %c8 = arith.constant 8 : index
    %c0_13 = arith.constant 0 : index
    %19 = vector.load %arg4[%c8, %c0_13] : memref<64x64xbf16, #tpu.memory_space<vmem>>, vector<4x64xbf16>
    tpu.vector_store %arg4[%c8, %c0_13], %18 {strides = array<i32>} : memref<64x64xbf16, #tpu.memory_space<vmem>>, vector<4x64xbf16>,
    %20 = vector.extract_strided_slice %17 {offsets = [0, 8], sizes = [4, 64], strides = [1, 1]} : vector<4x72xbf16> to vector<4x64xbf16>
    %c40 = arith.constant 40 : index
    %c0_14 = arith.constant 0 : index
    %21 = vector.load %arg4[%c40, %c0_14] : memref<64x64xbf16, #tpu.memory_space<vmem>>, vector<4x64xbf16>
    tpu.vector_store %arg4[%c40, %c0_14], %20 {strides = array<i32>} : memref<64x64xbf16, #tpu.memory_space<vmem>>, vector<4x64xbf16>,
    %22 = arith.index_cast %c0_i32 : i32 to index
    %c3 = arith.constant 3 : index
    %c0_15 = arith.constant 0 : index
    %c0_16 = arith.constant 0 : index
    %23 = vector.load %arg2[%22, %c3, %c0_15, %c0_16] : memref<1x8x4x72xbf16, #tpu.memory_space<vmem>>, vector<1x1x4x72xbf16>
    %24 = vector.shape_cast %23 : vector<1x1x4x72xbf16> to vector<4x72xbf16>
    %25 = vector.extract_strided_slice %24 {offsets = [0, 0], sizes = [4, 64], strides = [1, 1]} : vector<4x72xbf16> to vector<4x64xbf16>
    %c12 = arith.constant 12 : index
    %c0_17 = arith.constant 0 : index
    %26 = vector.load %arg4[%c12, %c0_17] : memref<64x64xbf16, #tpu.memory_space<vmem>>, vector<4x64xbf16>
    tpu.vector_store %arg4[%c12, %c0_17], %25 {strides = array<i32>} : memref<64x64xbf16, #tpu.memory_space<vmem>>, vector<4x64xbf16>,
    %27 = vector.extract_strided_slice %24 {offsets = [0, 8], sizes = [4, 64], strides = [1, 1]} : vector<4x72xbf16> to vector<4x64xbf16>
    %c44 = arith.constant 44 : index
    %c0_18 = arith.constant 0 : index
    %28 = vector.load %arg4[%c44, %c0_18] : memref<64x64xbf16, #tpu.memory_space<vmem>>, vector<4x64xbf16>
    tpu.vector_store %arg4[%c44, %c0_18], %27 {strides = array<i32>} : memref<64x64xbf16, #tpu.memory_space<vmem>>, vector<4x64xbf16>,
    %29 = arith.index_cast %c0_i32 : i32 to index
    %c4_19 = arith.constant 4 : index
    %c0_20 = arith.constant 0 : index
    %c0_21 = arith.constant 0 : index
    %30 = vector.load %arg2[%29, %c4_19, %c0_20, %c0_21] : memref<1x8x4x72xbf16, #tpu.memory_space<vmem>>, vector<1x1x4x72xbf16>
    %31 = vector.shape_cast %30 : vector<1x1x4x72xbf16> to vector<4x72xbf16>
    %32 = vector.extract_strided_slice %31 {offsets = [0, 0], sizes = [4, 64], strides = [1, 1]} : vector<4x72xbf16> to vector<4x64xbf16>
    %c16 = arith.constant 16 : index
    %c0_22 = arith.constant 0 : index
    %33 = vector.load %arg4[%c16, %c0_22] : memref<64x64xbf16, #tpu.memory_space<vmem>>, vector<4x64xbf16>
    tpu.vector_store %arg4[%c16, %c0_22], %32 {strides = array<i32>} : memref<64x64xbf16, #tpu.memory_space<vmem>>, vector<4x64xbf16>,
    %34 = vector.extract_strided_slice %31 {offsets = [0, 8], sizes = [4, 64], strides = [1, 1]} : vector<4x72xbf16> to vector<4x64xbf16>
    %c48 = arith.constant 48 : index
    %c0_23 = arith.constant 0 : index
    %35 = vector.load %arg4[%c48, %c0_23] : memref<64x64xbf16, #tpu.memory_space<vmem>>, vector<4x64xbf16>
    tpu.vector_store %arg4[%c48, %c0_23], %34 {strides = array<i32>} : memref<64x64xbf16, #tpu.memory_space<vmem>>, vector<4x64xbf16>,
    %36 = arith.index_cast %c0_i32 : i32 to index
    %c5 = arith.constant 5 : index
    %c0_24 = arith.constant 0 : index
    %c0_25 = arith.constant 0 : index
    %37 = vector.load %arg2[%36, %c5, %c0_24, %c0_25] : memref<1x8x4x72xbf16, #tpu.memory_space<vmem>>, vector<1x1x4x72xbf16>
    %38 = vector.shape_cast %37 : vector<1x1x4x72xbf16> to vector<4x72xbf16>
    %39 = vector.extract_strided_slice %38 {offsets = [0, 0], sizes = [4, 64], strides = [1, 1]} : vector<4x72xbf16> to vector<4x64xbf16>
    %c20 = arith.constant 20 : index
    %c0_26 = arith.constant 0 : index
    %40 = vector.load %arg4[%c20, %c0_26] : memref<64x64xbf16, #tpu.memory_space<vmem>>, vector<4x64xbf16>
    tpu.vector_store %arg4[%c20, %c0_26], %39 {strides = array<i32>} : memref<64x64xbf16, #tpu.memory_space<vmem>>, vector<4x64xbf16>,
    %41 = vector.extract_strided_slice %38 {offsets = [0, 8], sizes = [4, 64], strides = [1, 1]} : vector<4x72xbf16> to vector<4x64xbf16>
    %c52 = arith.constant 52 : index
    %c0_27 = arith.constant 0 : index
    %42 = vector.load %arg4[%c52, %c0_27] : memref<64x64xbf16, #tpu.memory_space<vmem>>, vector<4x64xbf16>
    tpu.vector_store %arg4[%c52, %c0_27], %41 {strides = array<i32>} : memref<64x64xbf16, #tpu.memory_space<vmem>>, vector<4x64xbf16>,
    %43 = arith.index_cast %c0_i32 : i32 to index
    %c6 = arith.constant 6 : index
    %c0_28 = arith.constant 0 : index
    %c0_29 = arith.constant 0 : index
    %44 = vector.load %arg2[%43, %c6, %c0_28, %c0_29] : memref<1x8x4x72xbf16, #tpu.memory_space<vmem>>, vector<1x1x4x72xbf16>
    %45 = vector.shape_cast %44 : vector<1x1x4x72xbf16> to vector<4x72xbf16>
    %46 = vector.extract_strided_slice %45 {offsets = [0, 0], sizes = [4, 64], strides = [1, 1]} : vector<4x72xbf16> to vector<4x64xbf16>
    %c24 = arith.constant 24 : index
    %c0_30 = arith.constant 0 : index
    %47 = vector.load %arg4[%c24, %c0_30] : memref<64x64xbf16, #tpu.memory_space<vmem>>, vector<4x64xbf16>
    tpu.vector_store %arg4[%c24, %c0_30], %46 {strides = array<i32>} : memref<64x64xbf16, #tpu.memory_space<vmem>>, vector<4x64xbf16>,
    %48 = vector.extract_strided_slice %45 {offsets = [0, 8], sizes = [4, 64], strides = [1, 1]} : vector<4x72xbf16> to vector<4x64xbf16>
    %c56 = arith.constant 56 : index
    %c0_31 = arith.constant 0 : index
    %49 = vector.load %arg4[%c56, %c0_31] : memref<64x64xbf16, #tpu.memory_space<vmem>>, vector<4x64xbf16>
    tpu.vector_store %arg4[%c56, %c0_31], %48 {strides = array<i32>} : memref<64x64xbf16, #tpu.memory_space<vmem>>, vector<4x64xbf16>,
    %50 = arith.index_cast %c0_i32 : i32 to index
    %c7 = arith.constant 7 : index
    %c0_32 = arith.constant 0 : index
    %c0_33 = arith.constant 0 : index
    %51 = vector.load %arg2[%50, %c7, %c0_32, %c0_33] : memref<1x8x4x72xbf16, #tpu.memory_space<vmem>>, vector<1x1x4x72xbf16>
    %52 = vector.shape_cast %51 : vector<1x1x4x72xbf16> to vector<4x72xbf16>
    %53 = vector.extract_strided_slice %52 {offsets = [0, 0], sizes = [4, 64], strides = [1, 1]} : vector<4x72xbf16> to vector<4x64xbf16>
    %c28 = arith.constant 28 : index
    %c0_34 = arith.constant 0 : index
    %54 = vector.load %arg4[%c28, %c0_34] : memref<64x64xbf16, #tpu.memory_space<vmem>>, vector<4x64xbf16>
    tpu.vector_store %arg4[%c28, %c0_34], %53 {strides = array<i32>} : memref<64x64xbf16, #tpu.memory_space<vmem>>, vector<4x64xbf16>,
    %55 = vector.extract_strided_slice %52 {offsets = [0, 8], sizes = [4, 64], strides = [1, 1]} : vector<4x72xbf16> to vector<4x64xbf16>
    %c60 = arith.constant 60 : index
    %c0_35 = arith.constant 0 : index
    %56 = vector.load %arg4[%c60, %c0_35] : memref<64x64xbf16, #tpu.memory_space<vmem>>, vector<4x64xbf16>
    tpu.vector_store %arg4[%c60, %c0_35], %55 {strides = array<i32>} : memref<64x64xbf16, #tpu.memory_space<vmem>>, vector<4x64xbf16>,
    %c0_36 = arith.constant 0 : index
    %c0_37 = arith.constant 0 : index
    %57 = vector.load %arg4[%c0_36, %c0_37] : memref<64x64xbf16, #tpu.memory_space<vmem>>, vector<64x64xbf16>
    %cst_38 = arith.constant dense<0.000000e+00> : vector<8x64xf32>
    %58 = tpu.matmul %0, %57, %cst_38 {dimension_numbers = #tpu.dot_dimension_numbers<[1], [0], [0], [1], [0, 0, 1, 1], [], []>} : vector<8x64xbf16>, vector<64x64xbf16>, vector<8x64xf32> -> vector<8x64xf32>
    %cst_39 = arith.constant dense<0.000000e+00> : vector<8xf32>
    %59 = vector.multi_reduction <add>, %58, %cst_39 [1] : vector<8x64xf32> to vector<8xf32>
    %60 = vector.shape_cast %59 : vector<8xf32> to vector<8x1xf32>
    %61 = vector.broadcast %cst : f32 to vector<8x1xf32>
    %62 = arith.mulf %60, %61 : vector<8x1xf32>
    %63 = vector.broadcast %62 : vector<8x1xf32> to vector<8x64xf32>
    %64 = arith.subf %58, %63 : vector<8x64xf32>
    %65 = arith.mulf %64, %64 : vector<8x64xf32>
    %cst_40 = arith.constant dense<0.000000e+00> : vector<8xf32>
    %66 = vector.multi_reduction <add>, %65, %cst_40 [1] : vector<8x64xf32> to vector<8xf32>
    %67 = vector.shape_cast %66 : vector<8xf32> to vector<8x1xf32>
    %68 = vector.broadcast %cst : f32 to vector<8x1xf32>
    %69 = arith.mulf %67, %68 : vector<8x1xf32>
    %cst_41 = arith.constant 9.99999974E-6 : f32
    %70 = vector.broadcast %cst_41 : f32 to vector<8x1xf32>
    %71 = arith.addf %69, %70 : vector<8x1xf32>
    %72 = math.rsqrt %71 : vector<8x1xf32>
    %73 = vector.broadcast %72 : vector<8x1xf32> to vector<8x64xf32>
    %74 = arith.mulf %64, %73 : vector<8x64xf32>
    %cst_42 = arith.constant 0.000000e+00 : f32
    %75 = vector.broadcast %cst_42 : f32 to vector<8x64xf32>
    %76 = arith.cmpf ogt, %74, %75 : vector<8x64xf32>
    %cst_43 = arith.constant 2.000000e-01 : f32
    %77 = vector.broadcast %cst_43 : f32 to vector<8x64xf32>
    %78 = arith.mulf %77, %74 : vector<8x64xf32>
    %79 = arith.select %76, %74, %78 : vector<8x64xi1>, vector<8x64xf32>
    %80 = arith.index_cast %c0_i32 : i32 to index
    %c0_44 = arith.constant 0 : index
    %c0_45 = arith.constant 0 : index
    %81 = vector.load %arg3[%80, %c0_44, %c0_45] : memref<1x8x64xf32, #tpu.memory_space<vmem>>, vector<1x8x64xf32>
    %82 = vector.shape_cast %81 : vector<1x8x64xf32> to vector<8x64xf32>
    %83 = vector.shape_cast %79 : vector<8x64xf32> to vector<1x8x64xf32>
    tpu.vector_store %arg3[%80, %c0_44, %c0_45], %83 {strides = array<i32>} : memref<1x8x64xf32, #tpu.memory_space<vmem>>, vector<1x8x64xf32>,
    %c1_i32 = arith.constant 1 : i32
    return
  }
  func.func @transform_0(%arg0: i32) -> (i32, i32) {
    %c0_i32 = arith.constant 0 : i32
    %c0_i32_0 = arith.constant 0 : i32
    %c0_i32_1 = arith.constant 0 : i32
    return %c0_i32, %c0_i32_0 : i32, i32
  }
  func.func @transform_1(%arg0: i32) -> (i32, i32, i32, i32) {
    %c0_i32 = arith.constant 0 : i32
    %c0_i32_0 = arith.constant 0 : i32
    %c0_i32_1 = arith.constant 0 : i32
    %c0_i32_2 = arith.constant 0 : i32
    return %arg0, %c0_i32, %c0_i32_0, %c0_i32_1 : i32, i32, i32, i32
  }
  func.func @transform_2(%arg0: i32) -> (i32, i32, i32) {
    %c0_i32 = arith.constant 0 : i32
    %c0_i32_0 = arith.constant 0 : i32
    %c0_i32_1 = arith.constant 0 : i32
    return %arg0, %c0_i32, %c0_i32_0 : i32, i32, i32
  }
}

</mosaic_0001>

<bundles_post_ra>
// kernel: tpu_custom_call.1
= control target key start
LH: loop header
LB: loop body
LE: loop exit
PB: predicated region body
PF: predicated region fallthrough
CT: control target
= control target key end

     0   :  { %7 = vsyncpa [#allocation4], 0  ;;  %s901_s0 = inlined_call_operand.hbm [shape: bf16[8,64], index: 0, kind: input, shape index: {}]   ;;  %s902_s1 = inlined_call_operand.hbm [shape: bf16[2,8,4,72], index: 1, kind: input, shape index: {}]   ;;  %s903_s2 = inlined_call_operand.hbm [shape: f32[2,8,64], index: 2, kind: output, shape index: {}]  }
   0x1   :  { %8 = vsyncpa [#allocation7], 0 }
   0x2   :  { %10 = vsyncpa [#allocation7 + $0x1], 0 }
   0x3   :  { %11 = vsyncpa [#allocation5], 0 }
   0x4   :  { %13 = vsyncpa [#allocation5 + $0x1], 0  ;;  %s720_s9 = smov 0   ;;  %s722_s10 = smov 0  }
   0x5   :  { %s724_s11 = smov 0   ;;  %s726_s12 = smov 0  }
   0x6 LB: > { %s741_s13 = sadd.s32 4294967295, %s699_s12   ;;  %s463_s14 = sadd.s32 4294967294, %s699_s12   ;;  %s699_s12 = sphi %s726_s12, %s914_s12   ;;  %s695_s11 = sphi %s724_s11, %s913_s11   ;;  %s691_s10 = sphi %s722_s10, %s912_s10   ;;  %s687_s9 = sphi %s720_s9, %s911_s9  }
   0x7   : > { %s745_s15 = sadd.s32 1, %s699_s12   ;;  %s47_s16 = sadd.s32 1, %s695_s11 }
   0x8   : > { %s44_s17 = ssub.s32 %s699_s12, %s745_s15  ;;  %p54_p0 = scmp.ne.s32.totalorder %s695_s11, %s691_s10 }
   0x9   : > { %p45_p1 = scmp.eq.s32.totalorder %s44_s17, 0  ;;  %p55_p2 = scmp.eq.s32.totalorder %s699_s12, 0 }
   0xa   : > { %p60_p3 = scmp.ne.s32.totalorder %s691_s10, %s687_s9  ;;  %p61_p4 = scmp.eq.s32.totalorder %s741_s13, 0 }
   0xb   : > { %s757_s18 = scalar_select %p45_p1, %s695_s11, %s47_s16  }
   0xc   : > { %p759_p5 = por %p55_p2, %p54_p0  ;;  %p765_p6 = por %p61_p4, %p60_p3 }
   0xd   : > { %p84_p7 = scmp.eq.s32.totalorder %s741_s13, 1  ;;  %p90_p8 = scmp.eq.s32.totalorder %s463_s14, 1 }
   0xe   : > { %p464_p9 = scmp.ge.s32.totalorder %s699_s12, 1  ;;  %p97_p10 = scmp.lt.s32.totalorder %s699_s12, 3 }
   0xf   : > { %p772_p11 = por %p84_p7, %p54_p0  ;;  %p776_p12 = por %p90_p8, %p60_p3 }
  0x10   : > { %p780_p13 = pnand %p464_p9, %p97_p10  ;;  %s109_s26 = sshll.u32 %s901_s0, 4  ;;  %s110_s26 = int_to_ptr.hbm [resolvable:$true] %s109_s26 }
  0x11   : > { %s701_s27 = smov [#allocation3]   ;;  %p528_p3 = scmp.lt.s32.totalorder %s699_s12, 2 }
  0x12   : > { %p515_p1 = pneg %p780_p13  ;;  %s111_s28 = sshll.u32 %s701_s27, 4  ;;  %s112_s28 = int_to_ptr.vmem [resolvable:$true] %s111_s28 }
  0x13   : > { %s122_s29 = sand.u32 1, %s695_s11   ;;  %p796_p7 = pnand %p528_p3, %p759_p5 }
  0x14   : > { %p516_p2 = pnand %p515_p1, %p61_p4  ;;  %s467_s3 = sshll.u32 %s122_s29, 4 }
  0x15   : > { %s502_s4 = sshll.u32 %s699_s12, 4  ;;  %s126_s14 = scalar_lea.vmem [#allocation6], %s467_s3 }
  0x16   : > { %518 = dma.hbm_to_vmem [thread:$0]  (!%p516_p2), %s110_s26, 64, %s112_s28, [#allocation4]  }
  0x17   : > { %s131_s7 = scalar_lea.hbm %s902_s1, %s502_s4  ;;  %s134_s16 = sshll.u32 %s126_s14, 4  ;;  %s135_s16 = int_to_ptr.vmem [resolvable:$true] %s134_s16 }
  0x18   : > { %s132_s8 = sshll.u32 %s131_s7, 4  ;;  %s123_s17 = scalar_lea.sflag [#allocation7], %s122_s29  ;;  %s133_s8 = int_to_ptr.hbm [resolvable:$true] %s132_s8 }
  0x19   : > { %s599_s24 = sshra.s32 %s133_s8, 4  ;;  %p603_p8 = pneg %p796_p7  ;;  %s600_s24 = int_to_ptr.hbm [resolvable:$true] %s599_s24 }
  0x1a   : > { %s601_s19 = scalar_lea.hbm %s600_s24, 16  ;;  %s606_s27 = scalar_lea.hbm %s902_s1, 32 }
  0x1b   : > { %p602_p5 = scmp.ne.s32.totalorder %s600_s24, %s601_s19  ;;  %p607_p1 = scmp.lt.s32.totalorder %s600_s24, %s902_s1 }
  0x1c   : > { %p608_p2 = scmp.lt.s32.totalorder %s606_s27, %s601_s19 }
  0x1d   : > { %p604_p9 = pnand %p603_p8, %p602_p5 }
  0x1e   : > { %p609_p3 = por %p608_p2, %p607_p1 }
  0x1f   : > { %p605_p10 = pneg %p604_p9 }
  0x21   : > { %p610_p0 = pnand %p609_p3, %p605_p10 }
  0x23   : > { %613 = shalt.err (!%p610_p0)
}
  0x24   : > { %s702_s29 = smov 32   ;;  %s703_s3 = smov 2  }
  0x25   : > { %522 = dma.hbm_to_vmem [thread:$0]  (!%p796_p7), %s133_s8, 256, %s135_s16, %s123_s17, %s702_s29, %s702_s29, %s703_s3  }
  0x26   : > { %146 = sbr.rel (%p780_p13) target bundleno = 683 (0x2ab), region = 28 }
  0x2b   : > { %674 = dma.done.wait (%p61_p4), [#allocation4], 64  }
  0x2c   : > { %676 = vsyncadd (%p61_p4), [#allocation4], 4294967232  ;;  %s821_s5 = sand.u32 1, %s691_s10  }
  0x2d   : > { %s472_s6 = sshll.u32 %s821_s5, 4  ;;  %s154_s7 = scalar_lea.sflag [#allocation7], %s821_s5 }
  0x2e   : > { %s825_s14 = scalar_lea.vmem [#allocation6], %s472_s6 }
  0x2f   : > { %678 = dma.done.wait (%p765_p6), %s154_s7, 256  }
  0x30   : > { %680 = vsyncadd (%p765_p6), %s154_s7, 4294967040  ;;  %v181_v0 = vld [vmem:[%s825_s14] sm:$0x3]  ;;  %v474_v1 = vld [vmem:[%s825_s14 + $0x2] sm:$0x3]  ;;  %s704_s23 = smov 120  }
  0x31   : > { %185 = vst [vmem:[#allocation1] ss:$2 sm:$0xff] %v181_v0  ;;  %v475_v4 = vld [vmem:[%s825_s14 + $0x4] sm:$0x3]  ;;  %v476_v6 = vld [vmem:[%s825_s14 + $0x6] sm:$0x3] }
  0x32   : > { %v477_v9 = vld [vmem:[%s825_s14 + $0x8] sm:$0x3]  ;;  %v478_v11 = vld [vmem:[%s825_s14 + $0xa] sm:$0x3]  ;;  %v479_v14 = vld [vmem:[%s825_s14 + $0xc] sm:$0x3] }
  0x33   : > { %vm182_vm0 = vcmask 517120   ;;  %v480_v16 = vld [vmem:[%s825_s14 + $0xe] sm:$0x3]  ;;  %vm199_vm1 = vcmask 519170   ;;  %vm322_vm2 = vcmask 523264   ;;  %s473_s20 = sshll.u32 %s821_s5, 3 }
  0x34   : > { %211 = vst.msk [vmem:[#allocation2 + $0x4] sm:$0x3] %vm182_vm0, %v475_v4  ;;  %v180_v32 = vld [vmem:[#allocation3] sm:$0xf]  ;;  %s499_s30 = sshll.u32 %s741_s13, 3  ;;  %s178_s24 = scalar_lea.vmem [#allocation8], %s473_s20 }
  0x35   : > { %238 = vst.msk [vmem:[#allocation2 + $0x8] sm:$0x3] %vm182_vm0, %v477_v9  ;;  %s376_s17 = scalar_lea.hbm %s903_s2, %s499_s30  ;;  %s378_s19 = sshll.u32 %s178_s24, 4  ;;  %s379_s19 = int_to_ptr.vmem [resolvable:$true] %s378_s19 }
  0x36   : > { %265 = vst.msk [vmem:[#allocation2 + $0xc] sm:$0x3] %vm182_vm0, %v479_v14  ;;  %s380_s25 = sshll.u32 %s376_s17, 4  ;;  %s366_s13 = scalar_lea.sflag [#allocation5], %s821_s5  ;;  %s381_s25 = int_to_ptr.hbm [resolvable:$true] %s380_s25 }
  0x37   : > { %183 = vst.msk [vmem:[#allocation2] sm:$0x3] %vm182_vm0, %v181_v0  ;;  %s643_s26 = sshra.s32 %s381_s25, 4  ;;  %s649_s29 = scalar_lea.hbm %s903_s2, 16  ;;  %s644_s26 = int_to_ptr.hbm [resolvable:$true] %s643_s26 }
  0x38   : > { %v186_v2 = vld.sshfl [vmem:[#allocation1] sm:$0xff pattern:$0x75643120]  ;;  %s645_s27 = scalar_lea.hbm %s644_s26, 8  ;;  %p650_p0 = scmp.lt.s32.totalorder %s644_s26, %s903_s2 }
  0x39   : > { %196 = vst [vmem:[#allocation1 + $0x1] ss:$2 sm:$0xff] %v474_v1  ;;  %188 = vrot.lane.b32.xlu2 %v186_v2, %s704_s23  ;;  %p646_p4 = scmp.ne.s32.totalorder %s644_s26, %s645_s27  ;;  %p651_p7 = scmp.lt.s32.totalorder %s649_s29, %s645_s27 }
  0x3b   : > { %p647_p6 = pnand %p646_p4, %p772_p11  ;;  %p652_p5 = por %p651_p7, %p650_p0 }
  0x3d   : > { %p648_p13 = pneg %p647_p6 }
  0x3f   : > { %p653_p8 = pnand %p652_p5, %p648_p13 }
  0x40   : > { %v197_v3 = vld.sshfl [vmem:[#allocation1] sm:$0xff pattern:$0x75643120] }
  0x41   : > { %202 = vst [vmem:[#allocation1 + $0x1] ss:$2 sm:$0xff] %v474_v1 }
  0x42   : > { %200 = vst.msk [vmem:[#allocation2] sm:$0xc] %vm199_vm1, %v197_v3 }
  0x48   : > { %v203_v5 = vld.sshfl [vmem:[#allocation1] sm:$0xff pattern:$0x75643120] }
  0x49   : > { %213 = vst [vmem:[#allocation1] ss:$2 sm:$0xff] %v475_v4  ;;  %205 = vrot.lane.b32.xlu2 %v203_v5, %s704_s23 }
  0x50   : > { %v214_v7 = vld.sshfl [vmem:[#allocation1] sm:$0xff pattern:$0x75643120] }
  0x51   : > { %224 = vst [vmem:[#allocation1 + $0x1] ss:$2 sm:$0xff] %v476_v6 }
  0x58   : > { %v225_v8 = vld.sshfl [vmem:[#allocation1] sm:$0xff pattern:$0x75643120] }
  0x59   : > { %229 = vst [vmem:[#allocation1 + $0x1] ss:$2 sm:$0xff] %v476_v6 }
  0x5a   : > { %227 = vst.msk [vmem:[#allocation2 + $0x4] sm:$0xc] %vm199_vm1, %v225_v8 }
  0x60   : > { %v230_v10 = vld.sshfl [vmem:[#allocation1] sm:$0xff pattern:$0x75643120] }
  0x61   : > { %240 = vst [vmem:[#allocation1] ss:$2 sm:$0xff] %v477_v9  ;;  %v503_v31 = vld [vmem:[#allocation2] sm:$0xff] }
  0x68   : > { %v241_v12 = vld.sshfl [vmem:[#allocation1] sm:$0xff pattern:$0x75643120] }
  0x69   : > { %243 = vrot.lane.b32.xlu0 %v241_v12, %s704_s23  ;;  %251 = vst [vmem:[#allocation1 + $0x1] ss:$2 sm:$0xff] %v478_v11 }
  0x70   : > { %v252_v13 = vld.sshfl [vmem:[#allocation1] sm:$0xff pattern:$0x75643120] }
  0x71   : > { %256 = vst [vmem:[#allocation1 + $0x1] ss:$2 sm:$0xff] %v478_v11 }
  0x72   : > { %254 = vst.msk [vmem:[#allocation2 + $0x8] sm:$0xc] %vm199_vm1, %v252_v13 }
  0x78   : > { %v257_v15 = vld.sshfl [vmem:[#allocation1] sm:$0xff pattern:$0x75643120] }
  0x79   : > { %259 = vrot.lane.b32.xlu0 %v257_v15, %s704_s23  ;;  %267 = vst [vmem:[#allocation1] ss:$2 sm:$0xff] %v479_v14 }
  0x80   : > { %v268_v17 = vld.sshfl [vmem:[#allocation1] sm:$0xff pattern:$0x75643120] }
  0x81   : > { %270 = vrot.lane.b32.xlu1 %v268_v17, %s704_s23  ;;  %278 = vst [vmem:[#allocation1 + $0x1] ss:$2 sm:$0xff] %v480_v16  ;;  %216 = vrot.lane.b32.xlu0 %v214_v7, %s704_s23 }
  0x88   : > { %v279_v18 = vld.sshfl [vmem:[#allocation1] sm:$0xff pattern:$0x75643120] }
  0x89   : > { %283 = vst [vmem:[#allocation1 + $0x1] ss:$2 sm:$0xff] %v480_v16 }
  0x8a   : > { %281 = vst.msk [vmem:[#allocation2 + $0xc] sm:$0xc] %vm199_vm1, %v279_v18 }
  0x90   : > { %v284_v19 = vld.sshfl [vmem:[#allocation1] sm:$0xff pattern:$0x75643120] }
  0x91   : > { %286 = vrot.lane.b32.xlu1 %v284_v19, %s704_s23  ;;  %v504_v30 = vld [vmem:[#allocation2 + $0x8] sm:$0xff] }
  0x93   : > { %v189_v20 = vpop.permute.xlu2 %188 }
  0x94   : > { %191 = vst.msk [vmem:[#allocation2 + $0x10] sm:$0x3] %vm182_vm0, %v189_v20 }
  0x99   : > { %232 = vrot.lane.b32.xlu1 %v230_v10, %s704_s23 }
  0xa3   : > { %v206_v21 = vpop.permute.xlu2 %205 }
  0xa4   : > { %208 = vst.msk [vmem:[#allocation2 + $0x10] sm:$0xc] %vm199_vm1, %v206_v21 }
  0xdb   : > { %v244_v22 = vpop.permute.xlu0 %243 }
  0xdc   : > { %246 = vst.msk [vmem:[#allocation2 + $0x18] sm:$0x3] %vm182_vm0, %v244_v22 }
  0xeb   : > { %v260_v23 = vpop.permute.xlu0 %259 }
  0xec   : > { %262 = vst.msk [vmem:[#allocation2 + $0x18] sm:$0xc] %vm199_vm1, %v260_v23 }
  0xf3   : > { %v271_v24 = vpop.permute.xlu1 %270  ;;  %v217_v25 = vpop.permute.xlu0 %216 }
  0xf4   : > { %273 = vst.msk [vmem:[#allocation2 + $0x1c] sm:$0x3] %vm182_vm0, %v271_v24 }
  0xf5   : > { %219 = vst.msk [vmem:[#allocation2 + $0x14] sm:$0x3] %vm182_vm0, %v217_v25 }
 0x103   : > { %v287_v26 = vpop.permute.xlu1 %286 }
 0x104   : > { %289 = vst.msk [vmem:[#allocation2 + $0x1c] sm:$0xc] %vm199_vm1, %v287_v26 }
 0x10b   : > { %v233_v27 = vpop.permute.xlu1 %232  ;;  %v506_v28 = vld [vmem:[#allocation2 + $0x18] sm:$0xff] }
 0x10c   : > { %235 = vst.msk [vmem:[#allocation2 + $0x14] sm:$0xc] %vm199_vm1, %v233_v27  ;;  %330 = vmatpush.bf16.msra.mxu0 %v506_v28 }
 0x113   : > { %v505_v29 = vld [vmem:[#allocation2 + $0x10] sm:$0xff] }
 0x114   : > { %331 = vmatpush.bf16.msra.mxu0 %v505_v29 }
 0x118   : > { %332 = vmatpush.bf16.msra.mxu0 %v504_v30 }
 0x11c   : > { %333 = vmatpush.bf16.msra.mxu0 %v503_v31 }
 0x11f   : > { %497 = vmatmul.msk.bf16.vlgmr.msra.gmra.mxu0 %vm322_vm2, %v180_v32 }
 0x19c   : > { %v335_v33 = vpop.f32.mrf.mxu0 }
 0x19d   : > { %v339_v34 = vsel %vm322_vm2, %v335_v33, 0.0 }
 0x19e   : > { %340 = vadd.xlane.f32.xlu2 %v339_v34 }
 0x1a4   : > { %v337_v35 = vpop.f32.mrf.mxu0 }
 0x211   : > { %v341_v36 = vpop.xlane.xlu2 %340 }
 0x212   : > { %v342_v37 = vmul.f32 0.015625, %v341_v36 }
 0x214   : > { %v343_v38 = vsub.f32 %v335_v33, %v342_v37 }
 0x216   : > { %v344_v39 = vmul.f32 %v343_v38, %v343_v38 }
 0x218   : > { %v345_v40 = vsel %vm322_vm2, %v344_v39, 0.0 }
 0x219   : > { %346 = vadd.xlane.f32.xlu0 %v345_v40 }
 0x28c   : > { %v347_v41 = vpop.xlane.xlu0 %346 }
 0x28d   : > { %v348_v42 = vmul.f32 0.015625, %v347_v41 }
 0x28f   : > { %v349_v43 = vadd.f32 1e-05, %v348_v42 }
 0x291   : > { %567 = vrsqrt.f32 %v349_v43  ;;  %vm356_vm4 = vweird.f32 %v349_v43 }
 0x297   : > { %v568_v44 = vpop.eup %567 }
 0x298   : > { %v351_v45 = vmul.f32 %v568_v44, %v349_v43  ;;  %vm357_vm3 = vweird.f32 %v568_v44 }
 0x299   : > { %vm358_vm5 = vmor %vm356_vm4, %vm357_vm3 }
 0x29a   : > { %v352_v46 = vmul.f32 %v568_v44, %v351_v45 }
 0x29c   : > { %v353_v47 = vmul.f32 0.5, %v352_v46 }
 0x29e   : > { %v354_v48 = vsub.f32 1.5, %v353_v47 }
 0x2a0   : > { %v355_v49 = vmul.f32 %v568_v44, %v354_v48 }
 0x2a2   : > { %v359_v50 = vsel %vm358_vm5, %v568_v44, %v355_v49 }
 0x2a3   : > { %v360_v51 = vmul.f32 %v359_v50, %v343_v38 }
 0x2a5   : > { %v362_v52 = vmul.f32 0.2, %v360_v51  ;;  %vm361_vm6 = vcmp.gt.f32.partialorder %v360_v51, 0.0 }
 0x2a7   : > { %v363_v53 = vsel %vm361_vm6, %v360_v51, %v362_v52 }
 0x2a8   : > { %364 = vst.msk [vmem:[%s178_s24] sm:$0xff] %vm322_vm2, %v363_v53 }
 0x2a9   : > { %656 = shalt.err (!%p653_p8)
}
 0x2aa   : > { %513 = dma.vmem_to_hbm [thread:$0]  (%p772_p11), %s379_s19, 128, %s381_s25, %s366_s13  }
 0x2ab PF: > { %s392_s5 = sand.u32 1, %s687_s9   ;;  %p910_p9 = scmp.ge.s32.totalorder %s699_s12, 2 }
 0x2ac   : > { %s393_s7 = scalar_lea.sflag [#allocation5], %s392_s5 }
 0x2ad   : > { %p524_p10 = pnand %p910_p9, %p776_p12 }
 0x2af   : > { %p525_p1 = pneg %p524_p10 }
 0x2b1   : > { %682 = dma.done.wait (%p525_p1), %s393_s7, 128  }
 0x2b2   : > { %684 = vsyncadd (%p525_p1), %s393_s7, 4294967168  ;;  %p16_p2 = scmp.ge.s32.totalorder %s745_s15, 4   ;;  %s911_s9 = smov %s691_s10 }
 0x2b3   : > { %s912_s10 = smov %s695_s11  ;;  %s913_s11 = smov %s757_s18 }
 0x2b4   : > { %s914_s12 = smov %s745_s15  ;;  %18 = sbr.rel (!%p16_p2) target bundleno = 6 (0x6), region = 93 }
 0x2b9   :  { %399 = vsyncpa [#allocation4], 1 }
 0x2ba   :  { %401 = vsyncpa [#allocation4 + $0x1], 1 }
 0x2bb   :  { %402 = vsyncpa [#allocation7], 1 }
 0x2bc   :  { %404 = vsyncpa [#allocation7 + $0x1], 1 }
 0x2bd   :  { %405 = vsyncpa [#allocation5], 1 }
 0x2be   :  { %407 = vsyncpa [#allocation5 + $0x1], 1 }

</bundles_post_ra>
